<compile_context>
chip_gen: v7x
topology: tpu7x:2x2x1
jax: 0.10.0
libtpu: 0.0.40
codegen_flags: <defaults>
</compile_context>

<pallas_src>
import jax
import jax.numpy as jnp
from jax.experimental import pallas as pl
from jax.experimental.pallas import tpu as pltpu


def _sigmoid(h):
    # Mathematically identical to logistic sigmoid; one EUP op, no divide.
    return 0.5 * jnp.tanh(0.5 * h) + 0.5


def autoencoder_kernel(x_ref,
                       w1_ref, b1_ref,
                       w2_ref, b2_ref,
                       w3_ref, b3_ref,
                       w4_ref, b4_ref,
                       o_ref):
    # Everything is (feat, TB): batch on lanes, features on sublanes.
    h = x_ref[...]                                                       # (30, TB)

    h = _sigmoid(jnp.dot(w1_ref[...], h,
                         preferred_element_type=jnp.float32) + b1_ref[...])  # (20, TB)
    h = _sigmoid(jnp.dot(w2_ref[...], h,
                         preferred_element_type=jnp.float32) + b2_ref[...])  # (10, TB)
    h = _sigmoid(jnp.dot(w3_ref[...], h,
                         preferred_element_type=jnp.float32) + b3_ref[...])  # (20, TB)
    out = jnp.dot(w4_ref[...], h,
                  preferred_element_type=jnp.float32) + b4_ref[...]          # (30, TB)

    o_ref[...] = out.astype(o_ref.dtype)


def _round_up(n, m):
    return ((n + m - 1) // m) * m


def _choose_batch_tile(batch, block_b):
    """Lane-axis tile: multiple of 128 (or the full batch dim), and at least
    two grid steps for medium/large batches so the grid shards across cores."""
    if batch <= 256:
        return batch                      # single block; lane dim == full dim is legal
    tb = min(block_b, _round_up(batch, 128))
    if pl.cdiv(batch, tb) < 2:
        tb = _round_up(pl.cdiv(batch, 2), 128)
    return tb


def autoencoder_fraud_forward(x, params, *, block_b=4096):
    """x: (B, 30) float32 -> (B, 30) float32.
    params: W1..W4 stored as (out, in), b1..b4 stored as (out, 1)."""
    B, F = x.shape
    assert F == 30, f"expected 30 input features, got {F}"
    assert block_b % 128 == 0, "batch tile must be a multiple of 128 (lane axis)"

    tb = _choose_batch_tile(B, block_b)
    n_tiles = pl.cdiv(B, tb)

    # Batch on lanes: (30, B). One small XLA transpose each way; the in-kernel
    # compute savings dominate.
    x_t = x.T

    weight_args = (
        params["W1"], params["b1"],
        params["W2"], params["b2"],
        params["W3"], params["b3"],
        params["W4"], params["b4"],
    )

    def resident(a):
        # Full-array block with a constant index_map -> stays VMEM-resident
        # across all batch tiles (never re-DMA'd).
        return pl.BlockSpec(a.shape, lambda i: (0, 0))

    out_t = pl.pallas_call(
        autoencoder_kernel,
        out_shape=jax.ShapeDtypeStruct((30, B), jnp.float32),
        grid=(n_tiles,),
        in_specs=[pl.BlockSpec((30, tb), lambda i: (0, i))]
                 + [resident(a) for a in weight_args],
        out_specs=pl.BlockSpec((30, tb), lambda i: (0, i)),
        compiler_params=pltpu.CompilerParams(
            dimension_semantics=("parallel",),
        ),
    )(x_t, *weight_args)

    return out_t.T


def init_params(key):
    """Deterministic init mirroring nn.Linear default: U(-1/sqrt(fan_in), +).
    Weights stored as (out_features, in_features), biases as (out_features, 1)."""
    dims = [(30, 20), (20, 10), (10, 20), (20, 30)]   # (in, out) per layer
    params = {}
    keys = jax.random.split(key, 2 * len(dims))
    for i, (fan_in, fan_out) in enumerate(dims):
        bound = 1.0 / jnp.sqrt(jnp.float32(fan_in))
        w = jax.random.uniform(keys[2 * i], (fan_out, fan_in),
                               minval=-bound, maxval=bound, dtype=jnp.float32)
        b = jax.random.uniform(keys[2 * i + 1], (fan_out, 1),
                               minval=-bound, maxval=bound, dtype=jnp.float32)
        params[f"W{i + 1}"] = w
        params[f"b{i + 1}"] = b
    return params


def reference_forward(x, p):
    """Pure-JAX reference matching the PyTorch module (x @ W.T + b)."""
    h = jax.nn.sigmoid(x @ p["W1"].T + p["b1"][:, 0])
    h = jax.nn.sigmoid(h @ p["W2"].T + p["b2"][:, 0])
    h = jax.nn.sigmoid(h @ p["W3"].T + p["b3"][:, 0])
    return h @ p["W4"].T + p["b4"][:, 0]


if __name__ == "__main__":
    key = jax.random.PRNGKey(0)
    k_params, k_x1, k_x2 = jax.random.split(key, 3)

    params = init_params(k_params)

    # Small shape consistent with the module: batch=8, features=30 (single block).
    x_small = jax.random.normal(k_x1, (8, 30), dtype=jnp.float32)
    out_small = jax.block_until_ready(autoencoder_fraud_forward(x_small, params))
    ref_small = reference_forward(x_small, params)
    assert out_small.shape == (8, 30)
    assert jnp.allclose(out_small, ref_small, atol=3e-5, rtol=1e-4), "mismatch (small)"

    # Exercise the multi-tile grid + partial-last-block masking path
    # (B=300 -> tile of 256 lanes, 2 grid steps, second block partial, no pad).
    x_tiled = jax.random.normal(k_x2, (300, 30), dtype=jnp.float32)
    out_tiled = jax.block_until_ready(autoencoder_fraud_forward(x_tiled, params))
    ref_tiled = reference_forward(x_tiled, params)
    assert out_tiled.shape == (300, 30)
    assert jnp.allclose(out_tiled, ref_tiled, atol=3e-5, rtol=1e-4), "mismatch (tiled)"

    print("KERNEL_OK")
</pallas_src>

<mosaic_0001>
module attributes {stable_mosaic.version = 11 : i64} {
  func.func @autoencoder_kernel(%arg0: i32, %arg1: memref<30x8xf32, #tpu.memory_space<vmem>>, %arg2: memref<20x30xf32, #tpu.memory_space<vmem>>, %arg3: memref<20x1xf32, #tpu.memory_space<vmem>>, %arg4: memref<10x20xf32, #tpu.memory_space<vmem>>, %arg5: memref<10x1xf32, #tpu.memory_space<vmem>>, %arg6: memref<20x10xf32, #tpu.memory_space<vmem>>, %arg7: memref<20x1xf32, #tpu.memory_space<vmem>>, %arg8: memref<30x20xf32, #tpu.memory_space<vmem>>, %arg9: memref<30x1xf32, #tpu.memory_space<vmem>>, %arg10: memref<30x8xf32, #tpu.memory_space<vmem>>) attributes {dimension_semantics = [#tpu.dimension_semantics<parallel>], iteration_bounds = array<i64: 1>, scalar_prefetch = 0 : i64, scratch_operands = 0 : i64, tpu.core_type = #tpu.core_type<tc>, window_params = [{transform_indices = @transform_0, window_bounds = array<i64: 30, 8>}, {pipeline_mode = #tpu.pipeline_mode<synchronous>, transform_indices = @transform_1, window_bounds = array<i64: 20, 30>}, {pipeline_mode = #tpu.pipeline_mode<synchronous>, transform_indices = @transform_2, window_bounds = array<i64: 20, 1>}, {pipeline_mode = #tpu.pipeline_mode<synchronous>, transform_indices = @transform_3, window_bounds = array<i64: 10, 20>}, {pipeline_mode = #tpu.pipeline_mode<synchronous>, transform_indices = @transform_4, window_bounds = array<i64: 10, 1>}, {pipeline_mode = #tpu.pipeline_mode<synchronous>, transform_indices = @transform_5, window_bounds = array<i64: 20, 10>}, {pipeline_mode = #tpu.pipeline_mode<synchronous>, transform_indices = @transform_6, window_bounds = array<i64: 20, 1>}, {pipeline_mode = #tpu.pipeline_mode<synchronous>, transform_indices = @transform_7, window_bounds = array<i64: 30, 20>}, {pipeline_mode = #tpu.pipeline_mode<synchronous>, transform_indices = @transform_8, window_bounds = array<i64: 30, 1>}, {transform_indices = @transform_9, window_bounds = array<i64: 30, 8>}]} {
    %c0 = arith.constant 0 : index
    %c0_0 = arith.constant 0 : index
    %0 = vector.load %arg1[%c0, %c0_0] : memref<30x8xf32, #tpu.memory_space<vmem>>, vector<30x8xf32>
    %c0_1 = arith.constant 0 : index
    %c0_2 = arith.constant 0 : index
    %1 = vector.load %arg2[%c0_1, %c0_2] : memref<20x30xf32, #tpu.memory_space<vmem>>, vector<20x30xf32>
    %cst = arith.constant dense<0.000000e+00> : vector<20x8xf32>
    %2 = tpu.matmul %1, %0, %cst {dimension_numbers = #tpu.dot_dimension_numbers<[1], [0], [0], [1], [0, 0, 1, 1], [], []>} : vector<20x30xf32>, vector<30x8xf32>, vector<20x8xf32> -> vector<20x8xf32>
    %c0_3 = arith.constant 0 : index
    %c0_4 = arith.constant 0 : index
    %3 = vector.load %arg3[%c0_3, %c0_4] : memref<20x1xf32, #tpu.memory_space<vmem>>, vector<20x1xf32>
    %4 = vector.broadcast %3 : vector<20x1xf32> to vector<20x8xf32>
    %5 = arith.addf %2, %4 : vector<20x8xf32>
    %cst_5 = arith.constant 5.000000e-01 : f32
    %6 = vector.broadcast %cst_5 : f32 to vector<20x8xf32>
    %7 = arith.mulf %6, %5 : vector<20x8xf32>
    %8 = math.tanh %7 : vector<20x8xf32>
    %cst_6 = arith.constant 5.000000e-01 : f32
    %9 = vector.broadcast %cst_6 : f32 to vector<20x8xf32>
    %10 = arith.mulf %9, %8 : vector<20x8xf32>
    %cst_7 = arith.constant 5.000000e-01 : f32
    %11 = vector.broadcast %cst_7 : f32 to vector<20x8xf32>
    %12 = arith.addf %10, %11 : vector<20x8xf32>
    %c0_8 = arith.constant 0 : index
    %c0_9 = arith.constant 0 : index
    %13 = vector.load %arg4[%c0_8, %c0_9] : memref<10x20xf32, #tpu.memory_space<vmem>>, vector<10x20xf32>
    %cst_10 = arith.constant dense<0.000000e+00> : vector<10x8xf32>
    %14 = tpu.matmul %13, %12, %cst_10 {dimension_numbers = #tpu.dot_dimension_numbers<[1], [0], [0], [1], [0, 0, 1, 1], [], []>} : vector<10x20xf32>, vector<20x8xf32>, vector<10x8xf32> -> vector<10x8xf32>
    %c0_11 = arith.constant 0 : index
    %c0_12 = arith.constant 0 : index
    %15 = vector.load %arg5[%c0_11, %c0_12] : memref<10x1xf32, #tpu.memory_space<vmem>>, vector<10x1xf32>
    %16 = vector.broadcast %15 : vector<10x1xf32> to vector<10x8xf32>
    %17 = arith.addf %14, %16 : vector<10x8xf32>
    %cst_13 = arith.constant 5.000000e-01 : f32
    %18 = vector.broadcast %cst_13 : f32 to vector<10x8xf32>
    %19 = arith.mulf %18, %17 : vector<10x8xf32>
    %20 = math.tanh %19 : vector<10x8xf32>
    %cst_14 = arith.constant 5.000000e-01 : f32
    %21 = vector.broadcast %cst_14 : f32 to vector<10x8xf32>
    %22 = arith.mulf %21, %20 : vector<10x8xf32>
    %cst_15 = arith.constant 5.000000e-01 : f32
    %23 = vector.broadcast %cst_15 : f32 to vector<10x8xf32>
    %24 = arith.addf %22, %23 : vector<10x8xf32>
    %c0_16 = arith.constant 0 : index
    %c0_17 = arith.constant 0 : index
    %25 = vector.load %arg6[%c0_16, %c0_17] : memref<20x10xf32, #tpu.memory_space<vmem>>, vector<20x10xf32>
    %cst_18 = arith.constant dense<0.000000e+00> : vector<20x8xf32>
    %26 = tpu.matmul %25, %24, %cst_18 {dimension_numbers = #tpu.dot_dimension_numbers<[1], [0], [0], [1], [0, 0, 1, 1], [], []>} : vector<20x10xf32>, vector<10x8xf32>, vector<20x8xf32> -> vector<20x8xf32>
    %c0_19 = arith.constant 0 : index
    %c0_20 = arith.constant 0 : index
    %27 = vector.load %arg7[%c0_19, %c0_20] : memref<20x1xf32, #tpu.memory_space<vmem>>, vector<20x1xf32>
    %28 = vector.broadcast %27 : vector<20x1xf32> to vector<20x8xf32>
    %29 = arith.addf %26, %28 : vector<20x8xf32>
    %cst_21 = arith.constant 5.000000e-01 : f32
    %30 = vector.broadcast %cst_21 : f32 to vector<20x8xf32>
    %31 = arith.mulf %30, %29 : vector<20x8xf32>
    %32 = math.tanh %31 : vector<20x8xf32>
    %cst_22 = arith.constant 5.000000e-01 : f32
    %33 = vector.broadcast %cst_22 : f32 to vector<20x8xf32>
    %34 = arith.mulf %33, %32 : vector<20x8xf32>
    %cst_23 = arith.constant 5.000000e-01 : f32
    %35 = vector.broadcast %cst_23 : f32 to vector<20x8xf32>
    %36 = arith.addf %34, %35 : vector<20x8xf32>
    %c0_24 = arith.constant 0 : index
    %c0_25 = arith.constant 0 : index
    %37 = vector.load %arg8[%c0_24, %c0_25] : memref<30x20xf32, #tpu.memory_space<vmem>>, vector<30x20xf32>
    %cst_26 = arith.constant dense<0.000000e+00> : vector<30x8xf32>
    %38 = tpu.matmul %37, %36, %cst_26 {dimension_numbers = #tpu.dot_dimension_numbers<[1], [0], [0], [1], [0, 0, 1, 1], [], []>} : vector<30x20xf32>, vector<20x8xf32>, vector<30x8xf32> -> vector<30x8xf32>
    %c0_27 = arith.constant 0 : index
    %c0_28 = arith.constant 0 : index
    %39 = vector.load %arg9[%c0_27, %c0_28] : memref<30x1xf32, #tpu.memory_space<vmem>>, vector<30x1xf32>
    %40 = vector.broadcast %39 : vector<30x1xf32> to vector<30x8xf32>
    %41 = arith.addf %38, %40 : vector<30x8xf32>
    %c0_29 = arith.constant 0 : index
    %c0_30 = arith.constant 0 : index
    %42 = vector.load %arg10[%c0_29, %c0_30] : memref<30x8xf32, #tpu.memory_space<vmem>>, vector<30x8xf32>
    tpu.vector_store %arg10[%c0_29, %c0_30], %41 {strides = array<i32>} : memref<30x8xf32, #tpu.memory_space<vmem>>, vector<30x8xf32>,
    return
  }
  func.func @transform_0(%arg0: i32) -> (i32, i32) {
    %c0_i32 = arith.constant 0 : i32
    %c0_i32_0 = arith.constant 0 : i32
    return %c0_i32, %arg0 : i32, i32
  }
  func.func @transform_1(%arg0: i32) -> (i32, i32) {
    %c0_i32 = arith.constant 0 : i32
    %c0_i32_0 = arith.constant 0 : i32
    %c0_i32_1 = arith.constant 0 : i32
    return %c0_i32, %c0_i32_0 : i32, i32
  }
  func.func @transform_2(%arg0: i32) -> (i32, i32) {
    %c0_i32 = arith.constant 0 : i32
    %c0_i32_0 = arith.constant 0 : i32
    %c0_i32_1 = arith.constant 0 : i32
    return %c0_i32, %c0_i32_0 : i32, i32
  }
  func.func @transform_3(%arg0: i32) -> (i32, i32) {
    %c0_i32 = arith.constant 0 : i32
    %c0_i32_0 = arith.constant 0 : i32
    %c0_i32_1 = arith.constant 0 : i32
    return %c0_i32, %c0_i32_0 : i32, i32
  }
  func.func @transform_4(%arg0: i32) -> (i32, i32) {
    %c0_i32 = arith.constant 0 : i32
    %c0_i32_0 = arith.constant 0 : i32
    %c0_i32_1 = arith.constant 0 : i32
    return %c0_i32, %c0_i32_0 : i32, i32
  }
  func.func @transform_5(%arg0: i32) -> (i32, i32) {
    %c0_i32 = arith.constant 0 : i32
    %c0_i32_0 = arith.constant 0 : i32
    %c0_i32_1 = arith.constant 0 : i32
    return %c0_i32, %c0_i32_0 : i32, i32
  }
  func.func @transform_6(%arg0: i32) -> (i32, i32) {
    %c0_i32 = arith.constant 0 : i32
    %c0_i32_0 = arith.constant 0 : i32
    %c0_i32_1 = arith.constant 0 : i32
    return %c0_i32, %c0_i32_0 : i32, i32
  }
  func.func @transform_7(%arg0: i32) -> (i32, i32) {
    %c0_i32 = arith.constant 0 : i32
    %c0_i32_0 = arith.constant 0 : i32
    %c0_i32_1 = arith.constant 0 : i32
    return %c0_i32, %c0_i32_0 : i32, i32
  }
  func.func @transform_8(%arg0: i32) -> (i32, i32) {
    %c0_i32 = arith.constant 0 : i32
    %c0_i32_0 = arith.constant 0 : i32
    %c0_i32_1 = arith.constant 0 : i32
    return %c0_i32, %c0_i32_0 : i32, i32
  }
  func.func @transform_9(%arg0: i32) -> (i32, i32) {
    %c0_i32 = arith.constant 0 : i32
    %c0_i32_0 = arith.constant 0 : i32
    return %c0_i32, %arg0 : i32, i32
  }
}

</mosaic_0001>

<bundles_post_ra>
// kernel: tpu_custom_call.1
= control target key start
LH: loop header
LB: loop body
LE: loop exit
PB: predicated region body
PF: predicated region fallthrough
CT: control target
= control target key end

     0   :  { %v673_v0 = vmov 0.0|0.0   ;;  %vm67_vm0 = vcmask 1045504   ;;  %vm674_vm1 = vmmov 0   ;;  %v675_v6 = vmov 0.0   ;;  %s856_s0 = inlined_call_operand.vmem [shape: f32[30,8], index: 0, kind: input, shape index: {}]   ;;  %s857_s2 = inlined_call_operand.vmem [shape: f32[20,1], index: 2, kind: input, shape index: {}]   ;;  %s858_s1 = inlined_call_operand.vmem [shape: f32[20,30], index: 1, kind: input, shape index: {}]   ;;  %s859_s4 = inlined_call_operand.vmem [shape: f32[10,1], index: 4, kind: input, shape index: {}]   ;;  %s860_s6 = inlined_call_operand.vmem [shape: f32[20,1], index: 6, kind: input, shape index: {}]   ;;  %s861_s8 = inlined_call_operand.vmem [shape: f32[30,1], index: 8, kind: input, shape index: {}]   ;;  %s862_s3 = inlined_call_operand.vmem [shape: f32[10,20], index: 3, kind: input, shape index: {}]   ;;  %s863_s5 = inlined_call_operand.vmem [shape: f32[20,10], index: 5, kind: input, shape index: {}]   ;;  %s864_s7 = inlined_call_operand.vmem [shape: f32[30,20], index: 7, kind: input, shape index: {}]   ;;  %s865_s9 = inlined_call_operand.vmem [shape: f32[30,8], index: 9, kind: output, shape index: {}]  }
   0x1   :  { %627 = vmatprep.subr.bf16.mxu0 %v673_v0  ;;  %v32_v1 = vld [vmem:[%s856_s0] sm:$0xff]  ;;  %v33_v2 = vld [vmem:[%s856_s0 + $0x8] sm:$0xff]  ;;  %v34_v3 = vld [vmem:[%s856_s0 + $0x10] sm:$0xff]  ;;  %584 = vmatprep.mubr.msk.f32.mxu0 %vm674_vm1, %v675_v6  ;;  %v676_v7 = vmov 0   ;;  %vm677_vm2 = vmmov 1   ;;  %vm57_vm4 = vcmask 244736  }
   0x2   :  { %v628_v4 = vpack.c.bf16 %v33_v2, %v32_v1  ;;  %v35_v5 = vld [vmem:[%s856_s0 + $0x18] sm:$0x3f]  ;;  %655 = vset.pattern.permute.xlu0 %v676_v7  ;;  %656 = vset.pattern.permute.xlu1 %v676_v7  ;;  %v39_v9 = vld [vmem:[%s857_s2] sm:$0xff]  ;;  %vm632_vm3 = vmpackc.low %vm67_vm0, %vm677_vm2  ;;  %vm177_vm5 = vcmask 162816   ;;  %vm184_vm6 = vcmask 1043456   ;;  %vm302_vm7 = vcmask 1041408  }
   0x3   :  { %v631_v8 = vpack.c.bf16 %v35_v5, %v34_v3  ;;  %44 = vperm.xlu0 %655, %v39_v9   ;;  %v41_v10 = vld [vmem:[%s857_s2 + $0x10] sm:$0xf]  ;;  %v40_v11 = vld [vmem:[%s857_s2 + $0x8] sm:$0xff]  ;;  %v165_v12 = vld [vmem:[%s859_s4] sm:$0xff]  ;;  %vm292_vm9 = vcmask 80896   ;;  %vm526_vm10 = vcmask 64512  }
   0x4   :  { %629 = vmatpush3.bf16.msra.mxu0 %v628_v4  ;;  %54 = vperm.xlu1 %656, %v41_v10   ;;  %v36_v13 = vld [vmem:[%s858_s1] sm:$0xff]  ;;  %v166_v14 = vld [vmem:[%s859_s4 + $0x8] sm:$0x3]  ;;  %v276_v18 = vld [vmem:[%s860_s6 + $0x10] sm:$0xf]  ;;  %vm530_vm11 = vcmask 62464  }
   0x5   :  { %630 = vmatprep.subr.bf16.mxu0 %v673_v0  ;;  %v274_v15 = vld [vmem:[%s860_s6] sm:$0xff]  ;;  %v37_v16 = vld [vmem:[%s858_s1 + $0x8] sm:$0xff]  ;;  %v38_v19 = vld [vmem:[%s858_s1 + $0x10] sm:$0xf] }
   0x6   :  { %v275_v17 = vld [vmem:[%s860_s6 + $0x8] sm:$0xff]  ;;  %v402_v20 = vld [vmem:[%s861_s8] sm:$0xff]  ;;  %v404_v22 = vld [vmem:[%s861_s8 + $0x10] sm:$0xff] }
   0x7   :  { %49 = vperm.xlu0 %655, %v40_v11   ;;  %v403_v21 = vld [vmem:[%s861_s8 + $0x8] sm:$0xff]  ;;  %v405_v23 = vld [vmem:[%s861_s8 + $0x18] sm:$0x3f]  ;;  %v163_v24 = vld [vmem:[%s862_s3] sm:$0xff] }
   0x8   :  { %633 = vmatpush3.bf16.msk.msra.mxu0 %vm632_vm3, %v631_v8  ;;  %169 = vperm.xlu1 %656, %v165_v12   ;;  %v164_v50 = vld [vmem:[%s862_s3 + $0x8] sm:$0x3]  ;;  %vm640_vm8 = vmpackc.low %vm302_vm7, %vm677_vm2  ;;  %v271_v2 = vld [vmem:[%s863_s5] sm:$0xff] }
   0x9   :  { %599 = vmatprep.mubr.msk.f32.mxu1 %vm177_vm5, %v163_v24  ;;  %v272_v3 = vld [vmem:[%s863_s5 + $0x8] sm:$0xff]  ;;  %v273_v4 = vld [vmem:[%s863_s5 + $0x10] sm:$0xf]  ;;  %v398_v5 = vld [vmem:[%s864_s7] sm:$0xff] }
   0xa   :  { %v400_v7 = vld [vmem:[%s864_s7 + $0x10] sm:$0xff] }
   0xb   :  { %585 = vmatmul.mubr.msk.f32.vlgmr.msra.gmra.mrb[0].mxu0 %vm57_vm4, %v36_v13  ;;  %174 = vperm.xlu0 %655, %v166_v14  }
   0xc   :  { %587 = vmatprep.mubr.msk.f32.mxu0 %vm674_vm1, %v675_v6  ;;  %279 = vperm.xlu1 %656, %v274_v15  }
   0xf   :  { %588 = vmatmul.mubr.msk.f32.gmra.mrb[2].mxu0 %vm57_vm4, %v37_v16  ;;  %284 = vperm.xlu0 %655, %v275_v17  }
  0x10   :  { %590 = vmatprep.mubr.msk.f32.mxu0 %vm674_vm1, %v675_v6  ;;  %289 = vperm.xlu1 %656, %v276_v18  }
  0x13   :  { %591 = vmatmul.mubr.msk.f32.gmra.mrb[4].mxu0 %vm57_vm4, %v38_v19  ;;  %408 = vperm.xlu0 %655, %v402_v20  }
  0x14   :  { %413 = vperm.xlu1 %656, %v403_v21   ;;  %621 = vmatprep.mubr.msk.f32.mxu0 %vm177_vm5, %v398_v5 }
  0x17   :  { %418 = vperm.xlu0 %655, %v404_v22  }
  0x18   :  { %423 = vperm.xlu1 %656, %v405_v23  }
  0x82   :  { %v45_v25 = vpop.permute.xlu0 %44 }
  0x83   :  { %v55_v35 = vpop.permute.xlu1 %54 }
  0x86   :  { %v50_v30 = vpop.permute.xlu0 %49 }
  0x87   :  { %v170_v53 = vpop.permute.xlu1 %169 }
  0x8a   :  { %v175_v51 = vpop.permute.xlu0 %174 }
  0x8b   :  { %v280_v8 = vpop.permute.xlu1 %279 }
  0x8e   :  { %v285_v12 = vpop.permute.xlu0 %284 }
  0x8f   :  { %v290_v17 = vpop.permute.xlu1 %289 }
  0xde   :  { %v137_v26 = vpop.f32.mrb[0].mxu0 }
  0xdf   :  { %v138_v27 = vadd.f32 %v137_v26, %v45_v25  ;;  %v586_v28 = vpop.f32.mrb[1].mxu0 }
  0xe1   :  { %v151_v29 = vmul.f32 0.5, %v138_v27 }
  0xe2   :  { %v142_v31 = vpop.f32.mrb[2].mxu0 }
  0xe3   :  { %657 = vtanh.f32 %v151_v29  ;;  %v143_v32 = vadd.f32 %v142_v31, %v50_v30  ;;  %v589_v33 = vpop.f32.mrb[3].mxu0 }
  0xe4   :  { %v401_v33 = vld [vmem:[%s864_s7 + $0x18] sm:$0x3f] }
  0xe5   :  { %v152_v34 = vmul.f32 0.5, %v143_v32  ;;  %v399_v32 = vld [vmem:[%s864_s7 + $0x8] sm:$0xff] }
  0xe6   :  { %v147_v36 = vpop.f32.mrb[4].mxu0 }
  0xe7   :  { %659 = vtanh.f32 %v152_v34  ;;  %v148_v37 = vadd.f32 %v147_v36, %v55_v35  ;;  %v592_v38 = vpop.f32.mrb[5].mxu0  ;;  %v409_v34 = vpop.permute.xlu0 %408 }
  0xe8   :  { %v414_v35 = vpop.permute.xlu1 %413 }
  0xe9   :  { %v153_v39 = vmul.f32 0.5, %v148_v37 }
  0xeb   :  { %661 = vtanh.f32 %v153_v39  ;;  %v419_v36 = vpop.permute.xlu0 %418 }
  0xec   :  { %v424_v37 = vpop.permute.xlu1 %423 }
  0xed   :  { %v658_v40 = vpop.eup %657 }
  0xee   :  { %v157_v41 = vmul.f32 0.5, %v658_v40 }
  0xf0   :  { %v160_v44 = vadd.f32 0.5, %v157_v41 }
  0xf1   :  { %v660_v42 = vpop.eup %659 }
  0xf2   :  { %v158_v43 = vmul.f32 0.5, %v660_v42 }
  0xf4   :  { %v161_v45 = vadd.f32 0.5, %v158_v43 }
  0xf5   :  { %v662_v46 = vpop.eup %661 }
  0xf6   :  { %v159_v47 = vmul.f32 0.5, %v662_v46  ;;  %v634_v48 = vpack.c.bf16 %v161_v45, %v160_v44 }
  0xf8   :  { %v162_v49 = vadd.f32 0.5, %v159_v47  ;;  %635 = vmatprep.subr.bf16.mxu1 %v634_v48 }
  0xf9   :  { %637 = vmatpush3.bf16.msra.mxu1 %v634_v48 }
  0xfa   :  { %597 = vmatprep.subr.msk.mxu1 %vm184_vm6, %v162_v49 }
  0xfd   :  { %598 = vmatpush3.msk.msra.mxu1 %vm184_vm6, %v162_v49 }
  0xfe   :  { %600 = vmatmul.mubr.msk.f32.vlgmr.msra.gmra.mrb[0].mxu1 %vm177_vm5, %v164_v50  ;;  %638 = vmatprep.subr.bf16.mxu1 %v673_v0 }
  0xff   :  { %606 = vmatprep.mubr.msk.f32.mxu1 %vm674_vm1, %v675_v6 }
 0x1d1   :  { %v601_v52 = vpop.f32.mrb[0].mxu1 }
 0x1d2   :  { %v260_v54 = vadd.f32 %v601_v52, %v175_v51  ;;  %v254_v55 = vpop.f32.mrb[1].mxu1 }
 0x1d3   :  { %v255_v56 = vadd.f32 %v254_v55, %v170_v53 }
 0x1d4   :  { %v264_v57 = vmul.f32 0.5, %v260_v54 }
 0x1d5   :  { %v263_v58 = vmul.f32 0.5, %v255_v56 }
 0x1d6   :  { %663 = vtanh.f32 %v264_v57 }
 0x1d7   :  { %665 = vtanh.f32 %v263_v58 }
 0x1e0   :  { %v664_v59 = vpop.eup %663 }
 0x1e1   :  { %v666_v60 = vpop.eup %665  ;;  %v268_v61 = vmul.f32 0.5, %v664_v59 }
 0x1e2   :  { %v267_v62 = vmul.f32 0.5, %v666_v60 }
 0x1e3   :  { %v270_v63 = vadd.f32 0.5, %v268_v61 }
 0x1e4   :  { %v269_v0 = vadd.f32 0.5, %v267_v62 }
 0x1e6   :  { %v639_v1 = vpack.c.bf16 %v270_v63, %v269_v0 }
 0x1e8   :  { %641 = vmatpush3.bf16.msk.msra.mxu1 %vm640_vm8, %v639_v1 }
 0x1eb   :  { %607 = vmatmul.mubr.msk.f32.vlgmr.msra.gmra.mrb[2].mxu1 %vm292_vm9, %v271_v2 }
 0x1ec   :  { %609 = vmatprep.mubr.msk.f32.mxu1 %vm674_vm1, %v675_v6 }
 0x1ef   :  { %610 = vmatmul.mubr.msk.f32.gmra.mrb[4].mxu1 %vm292_vm9, %v272_v3 }
 0x1f0   :  { %612 = vmatprep.mubr.msk.f32.mxu1 %vm674_vm1, %v675_v6 }
 0x1f3   :  { %613 = vmatmul.mubr.msk.f32.gmra.mrb[6].mxu1 %vm292_vm9, %v273_v4 }
 0x1f4   :  { %624 = vmatprep.mubr.msk.f32.mxu1 %vm177_vm5, %v400_v7 }
 0x2be   :  { %v372_v9 = vpop.f32.mrb[2].mxu1 }
 0x2bf   :  { %v373_v6 = vadd.f32 %v372_v9, %v280_v8  ;;  %v608_v10 = vpop.f32.mrb[3].mxu1 }
 0x2c1   :  { %v386_v11 = vmul.f32 0.5, %v373_v6 }
 0x2c2   :  { %v377_v13 = vpop.f32.mrb[4].mxu1 }
 0x2c3   :  { %667 = vtanh.f32 %v386_v11  ;;  %v378_v14 = vadd.f32 %v377_v13, %v285_v12  ;;  %v611_v15 = vpop.f32.mrb[5].mxu1 }
 0x2c5   :  { %v387_v16 = vmul.f32 0.5, %v378_v14 }
 0x2c6   :  { %v382_v18 = vpop.f32.mrb[6].mxu1 }
 0x2c7   :  { %669 = vtanh.f32 %v387_v16  ;;  %v383_v19 = vadd.f32 %v382_v18, %v290_v17  ;;  %v614_v20 = vpop.f32.mrb[7].mxu1 }
 0x2c9   :  { %v388_v21 = vmul.f32 0.5, %v383_v19 }
 0x2cb   :  { %671 = vtanh.f32 %v388_v21 }
 0x2cd   :  { %v668_v22 = vpop.eup %667 }
 0x2ce   :  { %v392_v23 = vmul.f32 0.5, %v668_v22 }
 0x2d0   :  { %v395_v26 = vadd.f32 0.5, %v392_v23 }
 0x2d1   :  { %v670_v24 = vpop.eup %669 }
 0x2d2   :  { %v393_v25 = vmul.f32 0.5, %v670_v24 }
 0x2d4   :  { %v396_v27 = vadd.f32 0.5, %v393_v25 }
 0x2d5   :  { %v672_v28 = vpop.eup %671 }
 0x2d6   :  { %v642_v29 = vpack.c.bf16 %v396_v27, %v395_v26  ;;  %v394_v30 = vmul.f32 0.5, %v672_v28 }
 0x2d8   :  { %v397_v31 = vadd.f32 0.5, %v394_v30  ;;  %643 = vmatprep.subr.bf16.mxu0 %v642_v29  ;;  %646 = vmatprep.subr.bf16.mxu1 %v642_v29 }
 0x2d9   :  { %645 = vmatpush3.bf16.msra.mxu0 %v642_v29  ;;  %648 = vmatpush3.bf16.msra.mxu1 %v642_v29 }
 0x2da   :  { %619 = vmatprep.subr.msk.mxu0 %vm184_vm6, %v397_v31  ;;  %647 = vmatprep.subr.msk.mxu1 %vm184_vm6, %v397_v31 }
 0x2dd   :  { %620 = vmatpush3.msk.msra.mxu0 %vm184_vm6, %v397_v31  ;;  %649 = vmatpush3.msk.msra.mxu1 %vm184_vm6, %v397_v31 }
 0x2de   :  { %622 = vmatmul.mubr.msk.f32.vlgmr.msra.gmra.mrb[6].mxu0 %vm177_vm5, %v399_v32  ;;  %625 = vmatmul.mubr.msk.f32.vlgmr.msra.gmra.mrb[8].mxu1 %vm177_vm5, %v401_v33 }
 0x3b1   :  { %v623_v38 = vpop.f32.mrb[6].mxu0  ;;  %v626_v39 = vpop.f32.mrb[8].mxu1 }
 0x3b2   :  { %v513_v40 = vadd.f32 %v623_v38, %v414_v35  ;;  %v523_v41 = vadd.f32 %v626_v39, %v424_v37  ;;  %v507_v42 = vpop.f32.mrb[7].mxu0  ;;  %v517_v43 = vpop.f32.mrb[9].mxu1 }
 0x3b3   :  { %v508_v44 = vadd.f32 %v507_v42, %v409_v34  ;;  %v518_v45 = vadd.f32 %v517_v43, %v419_v36 }
 0x3b4   :  { %528 = vst.msk [vmem:[%s865_s9 + $0x8] sm:$0xff] %vm526_vm10, %v513_v40 }
 0x3b5   :  { %531 = vst.msk [vmem:[%s865_s9 + $0x18] sm:$0x3f] %vm530_vm11, %v523_v41 }
 0x3b6   :  { %527 = vst.msk [vmem:[%s865_s9] sm:$0xff] %vm526_vm10, %v508_v44  ;;  %529 = vst.msk [vmem:[%s865_s9 + $0x10] sm:$0xff] %vm526_vm10, %v518_v45 }

</bundles_post_ra>
